<compile_context>
chip_gen: v5e
topology: v5e:2x2
jax: 0.10.0
libtpu: 0.0.40
codegen_flags: <defaults>
</compile_context>

<pallas_src>
import functools

import jax
import jax.numpy as jnp
from jax.experimental import pallas as pl
from jax.experimental.pallas import tpu as pltpu

HIDDEN = 64          # per-branch hidden width (PyTorch module uses 64)
FUSED_HIDDEN = 128   # actor(64) + critic(64), lane-dense
OUT_LANES = 128      # lane-dense output slab width


def _round_up(x, m):
    return ((x + m - 1) // m) * m


def _a2c_kernel(x_ref, w1_ref, b1_ref, w2_ref, b2_ref, w3_ref, b3_ref,
                out_ref, *, output_dim):
    """Fused actor+critic forward for one batch tile.

    out columns: [0:od) = action_mean, [od:2od) = action_std, [2od] = state_value.
    """
    x = x_ref[...]  # [bb, in_dim], already f32

    h1 = jnp.dot(x, w1_ref[...], preferred_element_type=jnp.float32) + b1_ref[...]
    h1 = jnp.maximum(h1, 0.0)                                        # ReLU
    h2 = jnp.dot(h1, w2_ref[...], preferred_element_type=jnp.float32) + b2_ref[...]
    h2 = jnp.maximum(h2, 0.0)                                        # ReLU
    y = jnp.dot(h2, w3_ref[...], preferred_element_type=jnp.float32) + b3_ref[...]

    # Apply exp(clamp(., -5, 2)) only on the std lanes; other lanes pass through.
    lane = jax.lax.broadcasted_iota(jnp.int32, y.shape, 1)
    std_mask = (lane >= output_dim) & (lane < 2 * output_dim)
    out_ref[...] = jnp.where(std_mask, jnp.exp(jnp.clip(y, -5.0, 2.0)), y)


def init_params(key, input_dim, output_dim, hidden=HIDDEN):
    """PyTorch-style (uniform +-1/sqrt(fan_in)) init.

    Weights are [in, out]; biases are [1, out]."""
    def linear(k, fan_in, fan_out):
        kw, kb = jax.random.split(k)
        bound = 1.0 / jnp.sqrt(fan_in)
        w = jax.random.uniform(kw, (fan_in, fan_out), jnp.float32, -bound, bound)
        b = jax.random.uniform(kb, (1, fan_out), jnp.float32, -bound, bound)
        return w, b

    keys = jax.random.split(key, 6)
    aw1, ab1 = linear(keys[0], input_dim, hidden)
    aw2, ab2 = linear(keys[1], hidden, hidden)
    aw3, ab3 = linear(keys[2], hidden, output_dim)
    cw1, cb1 = linear(keys[3], input_dim, hidden)
    cw2, cb2 = linear(keys[4], hidden, hidden)
    cw3, cb3 = linear(keys[5], hidden, 1)
    return (aw1, ab1, aw2, ab2, aw3, ab3, cw1, cb1, cw2, cb2, cw3, cb3)


def pack_params(params, output_dim, hidden=HIDDEN):
    """One-time fusion of actor+critic weights into lane-dense/block-diagonal form.

    Off-diagonal blocks are exact zeros so the actor and critic paths never mix.
    """
    (aw1, ab1, aw2, ab2, aw3, ab3, cw1, cb1, cw2, cb2, cw3, cb3) = params
    od = output_dim
    assert 2 * od + 1 <= OUT_LANES, "output_dim too large for one 128-lane slab"

    # Layer 1: side-by-side columns.
    w1 = jnp.concatenate([aw1, cw1], axis=1)                     # [in, 128]
    b1 = jnp.concatenate([ab1, cb1], axis=1)                     # [1, 128]

    # Layer 2: block-diagonal.
    w2 = jnp.zeros((2 * hidden, 2 * hidden), jnp.float32)
    w2 = w2.at[:hidden, :hidden].set(aw2)
    w2 = w2.at[hidden:, hidden:].set(cw2)
    b2 = jnp.concatenate([ab2, cb2], axis=1)                     # [1, 128]

    # Layer 3: lane-dense output slab layout.
    w3 = jnp.zeros((2 * hidden, OUT_LANES), jnp.float32)
    w3 = w3.at[:hidden, :od].set(aw3)                # mean columns
    w3 = w3.at[:hidden, od:2 * od].set(aw3)          # (pre-exp) std columns
    w3 = w3.at[hidden:, 2 * od:2 * od + 1].set(cw3)  # value column
    b3 = jnp.zeros((1, OUT_LANES), jnp.float32)
    b3 = b3.at[:, :od].set(ab3)
    b3 = b3.at[:, od:2 * od].set(ab3)
    b3 = b3.at[:, 2 * od:2 * od + 1].set(cb3)

    return (w1, b1, w2, b2, w3, b3)


@functools.partial(jax.jit, static_argnames=("output_dim", "max_block_b"))
def a2c_forward(state, packed, output_dim, max_block_b=256):
    """Runs the fused kernel; returns (action_mean, action_std, state_value)."""
    B, D = state.shape
    w1, b1, w2, b2, w3, b3 = packed

    # Batch tile: multiple of 8 sublanes, capped so activations stay small in VMEM
    # (re-derived safe for v7x's 64 MiB as well: 2 bufs * 256*128*4B per stream).
    bb = min(max_block_b, _round_up(B, 8))
    B_pad = _round_up(B, bb)
    if B_pad != B:
        state = jnp.pad(state, ((0, B_pad - B), (0, 0)))
    grid = (B_pad // bb,)

    kernel = functools.partial(_a2c_kernel, output_dim=output_dim)
    const2 = lambda i: (0, 0)   # weights/biases resident across all batch tiles

    out = pl.pallas_call(
        kernel,
        out_shape=jax.ShapeDtypeStruct((B_pad, OUT_LANES), jnp.float32),
        grid=grid,
        in_specs=[
            pl.BlockSpec((bb, D), lambda i: (i, 0)),        # x: tiled over batch
            pl.BlockSpec(w1.shape, const2),
            pl.BlockSpec(b1.shape, const2),
            pl.BlockSpec(w2.shape, const2),
            pl.BlockSpec(b2.shape, const2),
            pl.BlockSpec(w3.shape, const2),
            pl.BlockSpec(b3.shape, const2),
        ],
        out_specs=pl.BlockSpec((bb, OUT_LANES), lambda i: (i, 0)),
        compiler_params=pltpu.CompilerParams(
            dimension_semantics=("parallel",)),             # shards across v7x's 2 TCs
    )(state, w1, b1, w2, b2, w3, b3)

    mean = out[:B, :output_dim]
    std = out[:B, output_dim:2 * output_dim]
    value = out[:B, 2 * output_dim:2 * output_dim + 1]
    return mean, std, value


def reference_forward(state, params):
    """Pure-JAX reference of the original (unfused) PyTorch forward."""
    (aw1, ab1, aw2, ab2, aw3, ab3, cw1, cb1, cw2, cb2, cw3, cb3) = params

    def mlp(x, w1, b1, w2, b2, w3, b3):
        h1 = jnp.maximum(x @ w1 + b1, 0.0)
        h2 = jnp.maximum(h1 @ w2 + b2, 0.0)
        return h2 @ w3 + b3

    a = mlp(state, aw1, ab1, aw2, ab2, aw3, ab3)
    v = mlp(state, cw1, cb1, cw2, cb2, cw3, cb3)
    return a, jnp.exp(jnp.clip(a, -5.0, 2.0)), v


if __name__ == "__main__":
    key = jax.random.PRNGKey(0)
    k_param, k_state, k_state2 = jax.random.split(key, 3)

    batch = 8
    input_dim = 16
    output_dim = 4

    params = init_params(k_param, input_dim, output_dim)
    packed = pack_params(params, output_dim)

    # --- small batch (grid of 1) ---
    state = jax.random.normal(k_state, (batch, input_dim), jnp.float32)
    mean, std, value = a2c_forward(state, packed, output_dim)
    jax.block_until_ready((mean, std, value))

    ref_mean, ref_std, ref_value = reference_forward(state, params)
    assert mean.shape == (batch, output_dim)
    assert std.shape == (batch, output_dim)
    assert value.shape == (batch, 1)
    assert jnp.allclose(mean, ref_mean, atol=1e-5)
    assert jnp.allclose(std, ref_std, atol=1e-5)
    assert jnp.allclose(value, ref_value, atol=1e-5)

    # --- larger, non-multiple batch exercises the batch grid + padding path ---
    batch2 = 300
    state2 = jax.random.normal(k_state2, (batch2, input_dim), jnp.float32)
    mean2, std2, value2 = a2c_forward(state2, packed, output_dim)
    jax.block_until_ready((mean2, std2, value2))

    ref_mean2, ref_std2, ref_value2 = reference_forward(state2, params)
    assert mean2.shape == (batch2, output_dim)
    assert jnp.allclose(mean2, ref_mean2, atol=1e-5)
    assert jnp.allclose(std2, ref_std2, atol=1e-5)
    assert jnp.allclose(value2, ref_value2, atol=1e-5)

    print("KERNEL_OK")
</pallas_src>

<mosaic_0001>
module attributes {stable_mosaic.version = 11 : i64} {
  func.func @_a2c_kernel(%arg0: i32, %arg1: memref<8x16xf32, #tpu.memory_space<vmem>>, %arg2: memref<16x128xf32, #tpu.memory_space<vmem>>, %arg3: memref<1x128xf32, #tpu.memory_space<vmem>>, %arg4: memref<128x128xf32, #tpu.memory_space<vmem>>, %arg5: memref<1x128xf32, #tpu.memory_space<vmem>>, %arg6: memref<128x128xf32, #tpu.memory_space<vmem>>, %arg7: memref<1x128xf32, #tpu.memory_space<vmem>>, %arg8: memref<8x128xf32, #tpu.memory_space<vmem>>) attributes {dimension_semantics = [#tpu.dimension_semantics<parallel>], iteration_bounds = array<i64: 1>, scalar_prefetch = 0 : i64, scratch_operands = 0 : i64, tpu.core_type = #tpu.core_type<tc>, window_params = [{transform_indices = @transform_0, window_bounds = array<i64: 8, 16>}, {pipeline_mode = #tpu.pipeline_mode<synchronous>, transform_indices = @transform_1, window_bounds = array<i64: 16, 128>}, {pipeline_mode = #tpu.pipeline_mode<synchronous>, transform_indices = @transform_2, window_bounds = array<i64: 1, 128>}, {pipeline_mode = #tpu.pipeline_mode<synchronous>, transform_indices = @transform_3, window_bounds = array<i64: 128, 128>}, {pipeline_mode = #tpu.pipeline_mode<synchronous>, transform_indices = @transform_4, window_bounds = array<i64: 1, 128>}, {pipeline_mode = #tpu.pipeline_mode<synchronous>, transform_indices = @transform_5, window_bounds = array<i64: 128, 128>}, {pipeline_mode = #tpu.pipeline_mode<synchronous>, transform_indices = @transform_6, window_bounds = array<i64: 1, 128>}, {transform_indices = @transform_7, window_bounds = array<i64: 8, 128>}]} {
    %c0 = arith.constant 0 : index
    %c0_0 = arith.constant 0 : index
    %0 = vector.load %arg1[%c0, %c0_0] : memref<8x16xf32, #tpu.memory_space<vmem>>, vector<8x16xf32>
    %c0_1 = arith.constant 0 : index
    %c0_2 = arith.constant 0 : index
    %1 = vector.load %arg2[%c0_1, %c0_2] : memref<16x128xf32, #tpu.memory_space<vmem>>, vector<16x128xf32>
    %cst = arith.constant dense<0.000000e+00> : vector<8x128xf32>
    %2 = tpu.matmul %0, %1, %cst {dimension_numbers = #tpu.dot_dimension_numbers<[1], [0], [0], [1], [0, 0, 1, 1], [], []>} : vector<8x16xf32>, vector<16x128xf32>, vector<8x128xf32> -> vector<8x128xf32>
    %c0_3 = arith.constant 0 : index
    %c0_4 = arith.constant 0 : index
    %3 = vector.load %arg3[%c0_3, %c0_4] : memref<1x128xf32, #tpu.memory_space<vmem>>, vector<1x128xf32>
    %4 = vector.broadcast %3 : vector<1x128xf32> to vector<8x128xf32>
    %5 = arith.addf %2, %4 : vector<8x128xf32>
    %cst_5 = arith.constant 0.000000e+00 : f32
    %6 = vector.broadcast %cst_5 : f32 to vector<8x128xf32>
    %7 = arith.maximumf %5, %6 : vector<8x128xf32>
    %c0_6 = arith.constant 0 : index
    %c0_7 = arith.constant 0 : index
    %8 = vector.load %arg4[%c0_6, %c0_7] : memref<128x128xf32, #tpu.memory_space<vmem>>, vector<128x128xf32>
    %cst_8 = arith.constant dense<0.000000e+00> : vector<8x128xf32>
    %9 = tpu.matmul %7, %8, %cst_8 {dimension_numbers = #tpu.dot_dimension_numbers<[1], [0], [0], [1], [0, 0, 1, 1], [], []>} : vector<8x128xf32>, vector<128x128xf32>, vector<8x128xf32> -> vector<8x128xf32>
    %c0_9 = arith.constant 0 : index
    %c0_10 = arith.constant 0 : index
    %10 = vector.load %arg5[%c0_9, %c0_10] : memref<1x128xf32, #tpu.memory_space<vmem>>, vector<1x128xf32>
    %11 = vector.broadcast %10 : vector<1x128xf32> to vector<8x128xf32>
    %12 = arith.addf %9, %11 : vector<8x128xf32>
    %cst_11 = arith.constant 0.000000e+00 : f32
    %13 = vector.broadcast %cst_11 : f32 to vector<8x128xf32>
    %14 = arith.maximumf %12, %13 : vector<8x128xf32>
    %c0_12 = arith.constant 0 : index
    %c0_13 = arith.constant 0 : index
    %15 = vector.load %arg6[%c0_12, %c0_13] : memref<128x128xf32, #tpu.memory_space<vmem>>, vector<128x128xf32>
    %cst_14 = arith.constant dense<0.000000e+00> : vector<8x128xf32>
    %16 = tpu.matmul %14, %15, %cst_14 {dimension_numbers = #tpu.dot_dimension_numbers<[1], [0], [0], [1], [0, 0, 1, 1], [], []>} : vector<8x128xf32>, vector<128x128xf32>, vector<8x128xf32> -> vector<8x128xf32>
    %c0_15 = arith.constant 0 : index
    %c0_16 = arith.constant 0 : index
    %17 = vector.load %arg7[%c0_15, %c0_16] : memref<1x128xf32, #tpu.memory_space<vmem>>, vector<1x128xf32>
    %18 = vector.broadcast %17 : vector<1x128xf32> to vector<8x128xf32>
    %19 = arith.addf %16, %18 : vector<8x128xf32>
    %20 = tpu.iota {dimensions = array<i32: 1>} : vector<8x128xi32>
    %c4_i32 = arith.constant 4 : i32
    %21 = vector.broadcast %c4_i32 : i32 to vector<8x128xi32>
    %22 = arith.cmpi sge, %20, %21 : vector<8x128xi32>
    %c8_i32 = arith.constant 8 : i32
    %23 = vector.broadcast %c8_i32 : i32 to vector<8x128xi32>
    %24 = arith.cmpi slt, %20, %23 : vector<8x128xi32>
    %25 = arith.andi %22, %24 : vector<8x128xi1>
    %cst_17 = arith.constant -5.000000e+00 : f32
    %cst_18 = arith.constant 2.000000e+00 : f32
    %26 = vector.broadcast %cst_17 : f32 to vector<8x128xf32>
    %27 = arith.maximumf %26, %19 : vector<8x128xf32>
    %28 = vector.broadcast %cst_18 : f32 to vector<8x128xf32>
    %29 = arith.minimumf %28, %27 : vector<8x128xf32>
    %30 = math.exp %29 : vector<8x128xf32>
    %31 = arith.select %25, %30, %19 : vector<8x128xi1>, vector<8x128xf32>
    %c0_19 = arith.constant 0 : index
    %c0_20 = arith.constant 0 : index
    %32 = vector.load %arg8[%c0_19, %c0_20] : memref<8x128xf32, #tpu.memory_space<vmem>>, vector<8x128xf32>
    tpu.vector_store %arg8[%c0_19, %c0_20], %31 {strides = array<i32>} : memref<8x128xf32, #tpu.memory_space<vmem>>, vector<8x128xf32>,
    return
  }
  func.func @transform_0(%arg0: i32) -> (i32, i32) {
    %c0_i32 = arith.constant 0 : i32
    %c0_i32_0 = arith.constant 0 : i32
    return %arg0, %c0_i32 : i32, i32
  }
  func.func @transform_1(%arg0: i32) -> (i32, i32) {
    %c0_i32 = arith.constant 0 : i32
    %c0_i32_0 = arith.constant 0 : i32
    %c0_i32_1 = arith.constant 0 : i32
    return %c0_i32, %c0_i32_0 : i32, i32
  }
  func.func @transform_2(%arg0: i32) -> (i32, i32) {
    %c0_i32 = arith.constant 0 : i32
    %c0_i32_0 = arith.constant 0 : i32
    %c0_i32_1 = arith.constant 0 : i32
    return %c0_i32, %c0_i32_0 : i32, i32
  }
  func.func @transform_3(%arg0: i32) -> (i32, i32) {
    %c0_i32 = arith.constant 0 : i32
    %c0_i32_0 = arith.constant 0 : i32
    %c0_i32_1 = arith.constant 0 : i32
    return %c0_i32, %c0_i32_0 : i32, i32
  }
  func.func @transform_4(%arg0: i32) -> (i32, i32) {
    %c0_i32 = arith.constant 0 : i32
    %c0_i32_0 = arith.constant 0 : i32
    %c0_i32_1 = arith.constant 0 : i32
    return %c0_i32, %c0_i32_0 : i32, i32
  }
  func.func @transform_5(%arg0: i32) -> (i32, i32) {
    %c0_i32 = arith.constant 0 : i32
    %c0_i32_0 = arith.constant 0 : i32
    %c0_i32_1 = arith.constant 0 : i32
    return %c0_i32, %c0_i32_0 : i32, i32
  }
  func.func @transform_6(%arg0: i32) -> (i32, i32) {
    %c0_i32 = arith.constant 0 : i32
    %c0_i32_0 = arith.constant 0 : i32
    %c0_i32_1 = arith.constant 0 : i32
    return %c0_i32, %c0_i32_0 : i32, i32
  }
  func.func @transform_7(%arg0: i32) -> (i32, i32) {
    %c0_i32 = arith.constant 0 : i32
    %c0_i32_0 = arith.constant 0 : i32
    return %arg0, %c0_i32 : i32, i32
  }
}

</mosaic_0001>

<bundles_post_ra>
// kernel: a2c_forward.1
= control target key start
LH: loop header
LB: loop body
LE: loop exit
PB: predicated region body
PF: predicated region fallthrough
CT: control target
= control target key end

     0   :  { %12 = vsyncpa [#allocation3], 0  ;;  %s402_s0 = inlined_call_operand.hbm [shape: f32[8,16], index: 0, kind: input, shape index: {}]   ;;  %s403_s1 = inlined_call_operand.hbm [shape: f32[16,128], index: 1, kind: input, shape index: {}]   ;;  %s404_s2 = inlined_call_operand.vmem [shape: f32[1,128], index: 2, kind: input, shape index: {}]   ;;  %s405_s3 = inlined_call_operand.hbm [shape: f32[128,128], index: 3, kind: input, shape index: {}]   ;;  %s406_s4 = inlined_call_operand.vmem [shape: f32[1,128], index: 4, kind: input, shape index: {}]   ;;  %s407_s5 = inlined_call_operand.hbm [shape: f32[128,128], index: 5, kind: input, shape index: {}]   ;;  %s408_s6 = inlined_call_operand.vmem [shape: f32[1,128], index: 6, kind: input, shape index: {}]   ;;  %s409_s7 = inlined_call_operand.vmem [shape: f32[8,128], index: 7, kind: output, shape index: {}]  }
   0x1   :  { %13 = vsyncpa [#allocation5], 0  ;;  %s30_s26 = sshll.u32 %s403_s1, 4  ;;  %s31_s26 = int_to_ptr.hbm [resolvable:$true] %s30_s26 }
   0x2   :  { %14 = vsyncpa [#allocation8], 0  ;;  %s332_s27 = smov [#allocation4]   ;;  %s20_s8 = sshll.u32 %s402_s0, 4  ;;  %s21_s8 = int_to_ptr.hbm [resolvable:$true] %s20_s8 }
   0x3   :  { %s32_s28 = sshll.u32 %s332_s27, 4  ;;  %s333_s9 = smov 128   ;;  %s33_s28 = int_to_ptr.vmem [resolvable:$true] %s32_s28 }
   0x4   :  { %s334_s10 = smov 8   ;;  %s335_s11 = smov [#allocation2]  }
   0x5   :  { %38 = dma.hbm_to_vmem [thread:$0]  %s31_s26, 256, %s33_s28, [#allocation5], %s333_s9, %s333_s9, %s334_s10  }
   0x6   :  { %s22_s12 = sshll.u32 %s335_s11, 4  ;;  %s45_s15 = sshll.u32 %s405_s3, 4  ;;  %s23_s12 = int_to_ptr.vmem [resolvable:$true] %s22_s12  ;;  %s46_s15 = int_to_ptr.hbm [resolvable:$true] %s45_s15 }
   0x7   :  { %25 = dma.hbm_to_vmem [thread:$0]  %s21_s8, 128, %s23_s12, [#allocation3]  }
   0x8   :  { %s60_s17 = sshll.u32 %s407_s5, 4  ;;  %s336_s18 = smov [#allocation6]   ;;  %s61_s17 = int_to_ptr.hbm [resolvable:$true] %s60_s17 }
   0x9   :  { %s47_s19 = sshll.u32 %s336_s18, 4  ;;  %s337_s0 = smov [#allocation7]   ;;  %s48_s19 = int_to_ptr.vmem [resolvable:$true] %s47_s19 }
   0xa   :  { %53 = dma.hbm_to_vmem [thread:$0]  %s46_s15, 2048, %s48_s19, [#allocation5], %s333_s9, %s333_s9, %s334_s10  }
   0xb   :  { %s62_s20 = sshll.u32 %s337_s0, 4  ;;  %s63_s20 = int_to_ptr.vmem [resolvable:$true] %s62_s20 }
   0xc   :  { %68 = dma.hbm_to_vmem [thread:$0]  %s61_s17, 2048, %s63_s20, [#allocation8], %s333_s9, %s333_s9, %s334_s10  }
   0xd   :  { %326 = dma.done.wait [#allocation3], 128  }
   0xe   :  { %327 = vsyncadd [#allocation3], 4294967168 }
   0xf   :  { %328 = dma.done.wait [#allocation5], 2304  }
  0x10   :  { %329 = vsyncadd [#allocation5], 4294964992 }
  0x11   :  { %330 = dma.done.wait [#allocation8], 2048  }
  0x12   :  { %331 = vsyncadd [#allocation8], 4294965248  ;;  %v89_v0 = vld [vmem:[#allocation4 + $0x8] sm:$0xff]  ;;  %v88_v1 = vld [vmem:[#allocation4] sm:$0xff]  ;;  %vm94_vm0 = vcmask 130048   ;;  %v200_v46 = vlaneseq }
  0x13   :  { %112 = vmatpush.msra.mxu0 %v89_v0  ;;  %v87_v2 = vld [vmem:[#allocation2] sm:$0xff]  ;;  %v134_v3 = vld [vmem:[#allocation6 + $0x78] sm:$0xff]  ;;  %v133_v4 = vld [vmem:[#allocation6 + $0x70] sm:$0xff] }
  0x14   :  { %139 = vmatpush.msra.mxu1 %v134_v3  ;;  %v132_v5 = vld [vmem:[#allocation6 + $0x68] sm:$0xff]  ;;  %v131_v6 = vld [vmem:[#allocation6 + $0x60] sm:$0xff]  ;;  %v130_v7 = vld [vmem:[#allocation6 + $0x58] sm:$0xff]  ;;  %v201_v49 = vand.u32 127, %v200_v46 }
  0x15   :  { %113 = vmatpush.msra.mxu0 %v88_v1  ;;  %v129_v8 = vld [vmem:[#allocation6 + $0x50] sm:$0xff]  ;;  %v128_v9 = vld [vmem:[#allocation6 + $0x48] sm:$0xff]  ;;  %v127_v10 = vld [vmem:[#allocation6 + $0x40] sm:$0xff] }
  0x16   :  { %218 = vmatmul.msk.f32.vlgmr.msra.gmra.mxu0 %vm94_vm0, %v87_v2  ;;  %140 = vmatpush.msra.mxu1 %v133_v4  ;;  %v126_v11 = vld [vmem:[#allocation6 + $0x38] sm:$0xff]  ;;  %v125_v12 = vld [vmem:[#allocation6 + $0x30] sm:$0xff]  ;;  %v124_v13 = vld [vmem:[#allocation6 + $0x28] sm:$0xff]  ;;  %vm202_vm1 = vcmp.ge.s32.totalorder %v201_v49, 4  ;;  %vm203_vm2 = vcmp.lt.s32.totalorder %v201_v49, 8 }
  0x17   :  { %v123_v14 = vld [vmem:[#allocation6 + $0x20] sm:$0xff]  ;;  %v122_v15 = vld [vmem:[#allocation6 + $0x18] sm:$0xff]  ;;  %v121_v16 = vld [vmem:[#allocation6 + $0x10] sm:$0xff] }
  0x18   :  { %141 = vmatpush.msra.mxu1 %v132_v5  ;;  %v120_v17 = vld [vmem:[#allocation6 + $0x8] sm:$0xff]  ;;  %v119_v18 = vld [vmem:[#allocation6] sm:$0xff]  ;;  %v175_v19 = vld [vmem:[#allocation7 + $0x78] sm:$0xff] }
  0x19   :  { %v174_v20 = vld [vmem:[#allocation7 + $0x70] sm:$0xff]  ;;  %180 = vmatpush.msra.mxu2 %v175_v19  ;;  %v173_v21 = vld [vmem:[#allocation7 + $0x68] sm:$0xff]  ;;  %v172_v22 = vld [vmem:[#allocation7 + $0x60] sm:$0xff] }
  0x1a   :  { %142 = vmatpush.msra.mxu1 %v131_v6  ;;  %v171_v23 = vld [vmem:[#allocation7 + $0x58] sm:$0xff]  ;;  %v170_v24 = vld [vmem:[#allocation7 + $0x50] sm:$0xff]  ;;  %v169_v25 = vld [vmem:[#allocation7 + $0x48] sm:$0xff] }
  0x1b   :  { %181 = vmatpush.msra.mxu2 %v174_v20  ;;  %v168_v26 = vld [vmem:[#allocation7 + $0x40] sm:$0xff]  ;;  %v167_v27 = vld [vmem:[#allocation7 + $0x38] sm:$0xff]  ;;  %v166_v28 = vld [vmem:[#allocation7 + $0x30] sm:$0xff] }
  0x1c   :  { %143 = vmatpush.msra.mxu1 %v130_v7  ;;  %v165_v29 = vld [vmem:[#allocation7 + $0x28] sm:$0xff]  ;;  %v164_v30 = vld [vmem:[#allocation7 + $0x20] sm:$0xff]  ;;  %v163_v31 = vld [vmem:[#allocation7 + $0x18] sm:$0xff] }
  0x1d   :  { %182 = vmatpush.msra.mxu2 %v173_v21  ;;  %v225_v32 = vld [vmem:[%s404_s2] ss:$0 sm:$0xff]  ;;  %v162_v36 = vld [vmem:[#allocation7 + $0x10] sm:$0xff]  ;;  %v160_v38 = vld [vmem:[#allocation7] sm:$0xff] }
  0x1e   :  { %144 = vmatpush.msra.mxu1 %v129_v8  ;;  %v161_v37 = vld [vmem:[#allocation7 + $0x8] sm:$0xff]  ;;  %vm204_vm3 = vmand %vm202_vm1, %vm203_vm2 }
  0x1f   :  { %183 = vmatpush.msra.mxu2 %v172_v22  ;;  %v226_v39 = vld [vmem:[%s406_s4] ss:$0 sm:$0xff] }
  0x20   :  { %145 = vmatpush.msra.mxu1 %v128_v9  ;;  %v227_v43 = vld [vmem:[%s408_s6] ss:$0 sm:$0xff] }
  0x21   :  { %184 = vmatpush.msra.mxu2 %v171_v23 }
  0x22   :  { %146 = vmatpush.msra.mxu1 %v127_v10 }
  0x23   :  { %185 = vmatpush.msra.mxu2 %v170_v24 }
  0x24   :  { %147 = vmatpush.msra.mxu1 %v126_v11 }
  0x25   :  { %186 = vmatpush.msra.mxu2 %v169_v25 }
  0x26   :  { %148 = vmatpush.msra.mxu1 %v125_v12 }
  0x27   :  { %187 = vmatpush.msra.mxu2 %v168_v26 }
  0x28   :  { %149 = vmatpush.msra.mxu1 %v124_v13 }
  0x29   :  { %188 = vmatpush.msra.mxu2 %v167_v27 }
  0x2a   :  { %150 = vmatpush.msra.mxu1 %v123_v14 }
  0x2b   :  { %189 = vmatpush.msra.mxu2 %v166_v28 }
  0x2c   :  { %151 = vmatpush.msra.mxu1 %v122_v15 }
  0x2d   :  { %190 = vmatpush.msra.mxu2 %v165_v29 }
  0x2e   :  { %152 = vmatpush.msra.mxu1 %v121_v16 }
  0x2f   :  { %191 = vmatpush.msra.mxu2 %v164_v30 }
  0x30   :  { %153 = vmatpush.msra.mxu1 %v120_v17 }
  0x31   :  { %192 = vmatpush.msra.mxu2 %v163_v31 }
  0x32   :  { %154 = vmatpush.msra.mxu1 %v119_v18 }
  0x33   :  { %193 = vmatpush.msra.mxu2 %v162_v36 }
  0x35   :  { %194 = vmatpush.msra.mxu2 %v161_v37 }
  0x37   :  { %195 = vmatpush.msra.mxu2 %v160_v38 }
  0x93   :  { %v115_v33 = vpop.f32.mrf.mxu0 }
  0x94   :  { %v116_v34 = vadd.f32 %v225_v32, %v115_v33 }
  0x96   :  { %v118_v35 = vmax.f32 %v116_v34, 0.0 }
  0x98   :  { %155 = vmatmul.f32.vlgmr.msra.gmra.mxu1 %v118_v35 }
 0x115   :  { %v156_v40 = vpop.f32.mrf.mxu1 }
 0x116   :  { %v157_v41 = vadd.f32 %v226_v39, %v156_v40 }
 0x118   :  { %v159_v42 = vmax.f32 %v157_v41, 0.0 }
 0x11a   :  { %196 = vmatmul.f32.vlgmr.msra.gmra.mxu2 %v159_v42 }
 0x19d   :  { %v197_v44 = vpop.f32.mrf.mxu2 }
 0x19e   :  { %v198_v45 = vadd.f32 %v227_v43, %v197_v44 }
 0x1a0   :  { %v205_v47 = vmax.f32 %v198_v45, -5.0 }
 0x1a2   :  { %v206_v48 = vmin.f32 %v205_v47, 2.0 }
 0x1a4   :  { %v207_v50 = vmul.f32 1.442695, %v206_v48 }
 0x1a6   :  { %228 = vpow2.f32 %v207_v50 }
 0x1ac   :  { %v229_v51 = vpop.eup %228 }
 0x1ad   :  { %v209_v52 = vsel %vm204_vm3, %v229_v51, %v198_v45 }
 0x1ae   :  { %210 = vst [vmem:[%s409_s7] sm:$0xff] %v209_v52 }
 0x1af   :  { %215 = vsyncpa [#allocation3], 1 }
 0x1b0   :  { %216 = vsyncpa [#allocation5], 1 }
 0x1b1   :  { %217 = vsyncpa [#allocation8], 1 }

</bundles_post_ra>
